<compile_context>
chip_gen: v5e
topology: v5e:2x2
jax: 0.10.0
libtpu: 0.0.40
codegen_flags: <defaults>
</compile_context>

<pallas_src>
import functools

import jax
import jax.numpy as jnp
from jax.experimental import pallas as pl
from jax.experimental.pallas import tpu as pltpu


# ----------------------------------------------------------------------------
# Interpolation operators (align_corners=True bilinear, as in F.interpolate)
# ----------------------------------------------------------------------------
def _interp_matrix(out_size: int, in_size: int) -> jnp.ndarray:
    """Row-stochastic (out_size, in_size) 1-D bilinear resize matrix (f32)."""
    if out_size == 1:
        src = jnp.zeros((1,), dtype=jnp.float32)
    else:
        src = jnp.arange(out_size, dtype=jnp.float32) * (
            (in_size - 1) / (out_size - 1)
        )
    lo = jnp.clip(jnp.floor(src).astype(jnp.int32), 0, in_size - 1)
    hi = jnp.clip(lo + 1, 0, in_size - 1)
    frac = src - lo.astype(jnp.float32)
    rows = jnp.arange(out_size)
    m = jnp.zeros((out_size, in_size), dtype=jnp.float32)
    m = m.at[rows, lo].add(1.0 - frac)
    m = m.at[rows, hi].add(frac)
    return m


# ----------------------------------------------------------------------------
# Elementwise loss (always computed in f32)
# ----------------------------------------------------------------------------
def _elementwise_loss(pred, tgt_rs, mode):
    if mode == "l2":
        d = pred - tgt_rs
        return d * d
    if mode == "l1":
        return jnp.abs(pred - tgt_rs)
    if mode == "ce":
        # torch.nn.BCELoss: -(t*log(p) + (1-t)*log(1-p)); logs clamped at -100.
        log_p = jnp.maximum(jnp.log(pred), -100.0)
        log_1mp = jnp.maximum(jnp.log1p(-pred), -100.0)
        return -(tgt_rs * log_p + (1.0 - tgt_rs) * log_1mp)
    raise ValueError(f"unknown mode: {mode}")


# ----------------------------------------------------------------------------
# Kernel 1 (primary): single kron-operator matmul, fully lane-dense.
# ----------------------------------------------------------------------------
def _mask_loss_kron_kernel(inp_ref, tgt_ref, kt_ref, out_ref, *, mode, b_total, tb):
    """inp_ref: (TB, H*W) native dtype
       tgt_ref: (TB, H1*W1) native dtype
       kt_ref : (H1*W1, H*W) matmul dtype  == kron(Wy, Wx)^T
       out_ref: (1, 1) SMEM f32 (per-program partial sum)."""
    tgt = tgt_ref[...]
    if tgt.dtype != kt_ref.dtype:
        tgt = tgt.astype(kt_ref.dtype)

    # One big weight-stationary matmul: M=TB, K=H1*W1, N=H*W (f32 accumulation).
    tgt_rs = jnp.dot(tgt, kt_ref[...], preferred_element_type=jnp.float32)
    pred = inp_ref[...].astype(jnp.float32)

    elem = _elementwise_loss(pred, tgt_rs, mode)

    # Ragged last block: garbage rows are masked AFTER the elementwise math but
    # BEFORE the reduction (masking after a sum would be wrong).
    if b_total % tb != 0:
        rows = (jax.lax.broadcasted_iota(jnp.int32, elem.shape, 0)
                + pl.program_id(0) * tb)
        elem = jnp.where(rows < b_total, elem, 0.0)

    out_ref[0, 0] = jnp.sum(elem)


# ----------------------------------------------------------------------------
# Kernel 2 (fallback, large masks): two-stage resize, no broadcast_to of Wy.
# ----------------------------------------------------------------------------
def _mask_loss_2stage_kernel(inp_ref, tgt_ref, wy_ref, wxt_ref, out_ref, *,
                             mode, b_total, tb):
    """inp_ref: (TB, H, W); tgt_ref: (TB, H1, W1); wy_ref: (H, H1);
       wxt_ref: (W1, W); out_ref: (1, 1) SMEM f32."""
    h, w = inp_ref.shape[1], inp_ref.shape[2]
    h1, w1 = tgt_ref.shape[1], tgt_ref.shape[2]

    tgt = tgt_ref[...]
    if tgt.dtype != wxt_ref.dtype:
        tgt = tgt.astype(wxt_ref.dtype)

    # Stage 1 (W axis): fold batch into M -> one (TB*H1, W1) @ (W1, W) matmul.
    # (The reshape may materialize a copy if H1 % 8 != 0 — acceptable on this
    # large-mask fallback path.)
    tmp = jnp.dot(tgt.reshape(tb * h1, w1), wxt_ref[...],
                  preferred_element_type=jnp.float32).astype(wxt_ref.dtype)

    # Stage 2 (H axis): ONE (H, H1) @ (H1, TB*W) matmul with a single transpose
    # instead of TB tiny batched matmuls + a materialized broadcast of Wy.
    tmp_t = jnp.transpose(tmp.reshape(tb, h1, w), (1, 0, 2)).reshape(h1, tb * w)
    tgt_rs = jnp.dot(wy_ref[...], tmp_t,
                     preferred_element_type=jnp.float32).reshape(h, tb, w)

    # Bring the prediction into the same (H, TB, W) layout (leading-dim swap,
    # lane axis untouched) and do the loss in f32.
    pred = jnp.transpose(inp_ref[...], (1, 0, 2)).astype(jnp.float32)
    elem = _elementwise_loss(pred, tgt_rs, mode)

    if b_total % tb != 0:
        bidx = (jax.lax.broadcasted_iota(jnp.int32, elem.shape, 1)
                + pl.program_id(0) * tb)
        elem = jnp.where(bidx < b_total, elem, 0.0)

    out_ref[0, 0] = jnp.sum(elem)


# ----------------------------------------------------------------------------
# Wrapper
# ----------------------------------------------------------------------------
def mask_loss(inputs: jnp.ndarray, targets: jnp.ndarray, mode: str = "l2"):
    """inputs: (B, 1, H, W) predictions, targets: (B, 1, H1, W1). Returns scalar."""
    if mode not in ("l2", "l1", "ce"):
        raise ValueError(f"unknown mode: {mode}")
    b, c, h, w = inputs.shape
    _, c1, h1, w1 = targets.shape
    assert c == 1 and c1 == 1

    in_dt, tg_dt = inputs.dtype, targets.dtype
    itm_in = jnp.dtype(in_dt).itemsize
    itm_tg = jnp.dtype(tg_dt).itemsize
    # bf16/f16 targets feed the MXU natively; otherwise keep the resize in f32.
    mm_dt = tg_dt if (jnp.issubdtype(tg_dt, jnp.floating) and itm_tg == 2) \
        else jnp.float32
    mm_itm = jnp.dtype(mm_dt).itemsize

    # ---- generation-aware VMEM budget (v5e/v6e: 128 MiB, v7x: 64 MiB) -------
    try:
        phys_vmem = int(pltpu.get_tpu_info().vmem_capacity_bytes)
    except Exception:
        phys_vmem = 64 * 2**20          # conservative (v7x)
    big_vmem = phys_vmem >= 96 * 2**20
    vmem_limit = int(min(96 * 2**20, max(32 * 2**20, 0.55 * phys_vmem)))

    # ---- choose resize formulation ------------------------------------------
    kron_bytes = h * w * h1 * w1 * mm_itm
    use_kron = kron_bytes <= min(12 * 2**20, vmem_limit // 4)

    per_img_in = h * w * itm_in + h1 * w1 * itm_tg
    # DMA-amortization target: bigger blocks where VMEM allows it.
    target_in = (8 if big_vmem else 3) * 2**20

    def _plan(kron):
        const_bytes = kron_bytes if kron else (h * h1 + w1 * w) * mm_itm
        single_buf = const_bytes > 2 * 2**20     # single-buffer big constants
        const_mult = 1 if single_buf else 2
        if kron:
            # dbl-buffered blocks + f32 pred / tgt_rs / elem + low-res slack
            per_img = 2 * per_img_in + 3 * h * w * 4 + h1 * w1 * 4
        else:
            # includes the target-resolution intermediates (tmp, tmp_t, ...)
            per_img = (2 * per_img_in + 4 * h * w * 4
                       + h1 * w * (4 + 2 * mm_itm) + h1 * w1 * mm_itm)
        avail = vmem_limit - const_mult * const_bytes - 2 * 2**20
        tb = max(1, min(b, avail // per_img, max(1, target_in // per_img_in)))
        return int(tb), single_buf

    tb, single_buf = _plan(use_kron)
    if use_kron and tb < b:
        # In the 2-D (B, H*W) layout the batch is the sublane axis of the block,
        # so a partial block size must be a multiple of 8.
        tb = (tb // 8) * 8
        if tb < 8:
            use_kron = False                     # two-stage path has no constraint
            tb, single_buf = _plan(False)
    nblk = pl.cdiv(b, tb)

    wy = _interp_matrix(h, h1)                   # (H, H1)  f32
    wx = _interp_matrix(w, w1)                   # (W, W1)  f32

    def _const_spec(shape):
        idx = lambda i: (0,) * len(shape)
        if single_buf:
            try:   # grid-invariant constant: one buffer is enough
                return pl.BlockSpec(shape, idx, pipeline_mode=pl.Buffered(1))
            except (TypeError, ValueError):
                pass
        return pl.BlockSpec(shape, idx)

    cparams = pltpu.CompilerParams(
        dimension_semantics=("parallel",),       # per-program partials -> parallel
        vmem_limit_bytes=vmem_limit,
    )
    out_shape = jax.ShapeDtypeStruct((nblk, 1), jnp.float32)
    out_spec = pl.BlockSpec((1, 1), lambda i: (i, 0),
                            memory_space=pltpu.MemorySpace.SMEM)

    if use_kron:
        # kron(Wy, Wx)^T: (H1*W1, H*W); cast to the MXU input dtype.
        kt = jnp.kron(wy, wx).T.astype(mm_dt)
        inp2 = inputs.reshape(b, h * w)          # free HBM reshapes (row-major)
        tgt2 = targets.reshape(b, h1 * w1)
        kernel = functools.partial(_mask_loss_kron_kernel,
                                   mode=mode, b_total=b, tb=tb)
        partials = pl.pallas_call(
            kernel,
            out_shape=out_shape,
            grid_spec=pltpu.PrefetchScalarGridSpec(
                num_scalar_prefetch=0,
                grid=(nblk,),
                in_specs=[
                    pl.BlockSpec((tb, h * w), lambda i: (i, 0)),
                    pl.BlockSpec((tb, h1 * w1), lambda i: (i, 0)),
                    _const_spec((h1 * w1, h * w)),
                ],
                out_specs=out_spec,
            ),
            compiler_params=cparams,
        )(inp2, tgt2, kt)
    else:
        wy_c = wy.astype(mm_dt)                  # (H, H1)
        wxt = wx.T.astype(mm_dt)                 # (W1, W), transpose hoisted
        inp3 = inputs.reshape(b, h, w)
        tgt3 = targets.reshape(b, h1, w1)
        kernel = functools.partial(_mask_loss_2stage_kernel,
                                   mode=mode, b_total=b, tb=tb)
        partials = pl.pallas_call(
            kernel,
            out_shape=out_shape,
            grid_spec=pltpu.PrefetchScalarGridSpec(
                num_scalar_prefetch=0,
                grid=(nblk,),
                in_specs=[
                    pl.BlockSpec((tb, h, w), lambda i: (i, 0, 0)),
                    pl.BlockSpec((tb, h1, w1), lambda i: (i, 0, 0)),
                    _const_spec((h, h1)),
                    _const_spec((w1, w)),
                ],
                out_specs=out_spec,
            ),
            compiler_params=cparams,
        )(inp3, tgt3, wy_c, wxt)

    # mean over all b*h*w elements (nn.MSELoss / L1Loss / BCELoss default)
    return jnp.sum(partials) / (b * h * w)


# ----------------------------------------------------------------------------
# Pure-JAX reference (same interpolation matrices, all f32)
# ----------------------------------------------------------------------------
def _mask_loss_reference(inputs, targets, mode="l2"):
    b, _, h, w = inputs.shape
    _, _, h1, w1 = targets.shape
    wy = _interp_matrix(h, h1)
    wx = _interp_matrix(w, w1)
    t = targets.reshape(b, h1, w1).astype(jnp.float32)
    t_rs = jnp.einsum("yh,bhv,wv->byw", wy, t, wx)
    p = inputs.reshape(b, h, w).astype(jnp.float32)
    return jnp.mean(_elementwise_loss(p, t_rs, mode))


if __name__ == "__main__":
    key = jax.random.PRNGKey(0)
    k1, k2 = jax.random.split(key)
    # prediction map (B,1,H,W) and lower-res ground-truth mask (B,1,H1,W1)
    inputs = jax.random.uniform(k1, (2, 1, 16, 16), dtype=jnp.float32)
    targets = jax.random.uniform(k2, (2, 1, 8, 8), dtype=jnp.float32)

    for mode in ("l2", "l1", "ce"):
        loss = mask_loss(inputs, targets, mode=mode)
        jax.block_until_ready(loss)
        ref = _mask_loss_reference(inputs, targets, mode=mode)
        assert abs(float(loss) - float(ref)) < 1e-3 * max(1.0, abs(float(ref))), (
            mode, float(loss), float(ref))

    # bf16 inputs exercise the native-dtype MXU path (bf16 resize operator).
    loss_bf16 = mask_loss(inputs.astype(jnp.bfloat16),
                          targets.astype(jnp.bfloat16), mode="l2")
    jax.block_until_ready(loss_bf16)
    ref_bf16 = _mask_loss_reference(inputs.astype(jnp.bfloat16),
                                    targets.astype(jnp.bfloat16), mode="l2")
    assert abs(float(loss_bf16) - float(ref_bf16)) < 5e-2 * max(
        1e-3, abs(float(ref_bf16))), (float(loss_bf16), float(ref_bf16))

    print("KERNEL_OK")
</pallas_src>

<mosaic_0001>
module attributes {stable_mosaic.version = 11 : i64} {
  func.func @_mask_loss_kron_kernel(%arg0: i32, %arg1: memref<2x256xf32, #tpu.memory_space<vmem>>, %arg2: memref<2x64xf32, #tpu.memory_space<vmem>>, %arg3: memref<64x256xf32, #tpu.memory_space<vmem>>, %arg4: memref<1x1xf32, #tpu.memory_space<smem>>) attributes {dimension_semantics = [#tpu.dimension_semantics<parallel>], iteration_bounds = array<i64: 1>, scalar_prefetch = 0 : i64, scratch_operands = 0 : i64, tpu.core_type = #tpu.core_type<tc>, window_params = [{transform_indices = @transform_0, window_bounds = array<i64: 2, 256>}, {transform_indices = @transform_1, window_bounds = array<i64: 2, 64>}, {pipeline_mode = #tpu.pipeline_mode<synchronous>, transform_indices = @transform_2, window_bounds = array<i64: 64, 256>}, {transform_indices = @transform_3, window_bounds = array<i64: 1, 1>}]} {
    %c0 = arith.constant 0 : index
    %c0_0 = arith.constant 0 : index
    %0 = vector.load %arg2[%c0, %c0_0] : memref<2x64xf32, #tpu.memory_space<vmem>>, vector<2x64xf32>
    %c0_1 = arith.constant 0 : index
    %c0_2 = arith.constant 0 : index
    %1 = vector.load %arg3[%c0_1, %c0_2] : memref<64x256xf32, #tpu.memory_space<vmem>>, vector<64x256xf32>
    %cst = arith.constant dense<0.000000e+00> : vector<2x256xf32>
    %2 = tpu.matmul %0, %1, %cst {dimension_numbers = #tpu.dot_dimension_numbers<[1], [0], [0], [1], [0, 0, 1, 1], [], []>} : vector<2x64xf32>, vector<64x256xf32>, vector<2x256xf32> -> vector<2x256xf32>
    %c0_3 = arith.constant 0 : index
    %c0_4 = arith.constant 0 : index
    %3 = vector.load %arg1[%c0_3, %c0_4] : memref<2x256xf32, #tpu.memory_space<vmem>>, vector<2x256xf32>
    %4 = arith.subf %3, %2 : vector<2x256xf32>
    %5 = arith.mulf %4, %4 : vector<2x256xf32>
    %6 = vector.shape_cast %5 : vector<2x256xf32> to vector<1x2x256xf32>
    %cst_5 = arith.constant dense<0.000000e+00> : vector<1xf32>
    %7 = vector.multi_reduction <add>, %6, %cst_5 [1, 2] : vector<1x2x256xf32> to vector<1xf32>
    %8 = vector.shape_cast %7 : vector<1xf32> to vector<1x1x1xf32>
    %9 = vector.extract %8[0, 0, 0] : f32 from vector<1x1x1xf32>
    %c0_6 = arith.constant 0 : index
    %c0_7 = arith.constant 0 : index
    %10 = memref.load %arg4[%c0_6, %c0_7] : memref<1x1xf32, #tpu.memory_space<smem>>
    memref.store %9, %arg4[%c0_6, %c0_7] : memref<1x1xf32, #tpu.memory_space<smem>>
    return
  }
  func.func @transform_0(%arg0: i32) -> (i32, i32) {
    %c0_i32 = arith.constant 0 : i32
    %c0_i32_0 = arith.constant 0 : i32
    return %arg0, %c0_i32 : i32, i32
  }
  func.func @transform_1(%arg0: i32) -> (i32, i32) {
    %c0_i32 = arith.constant 0 : i32
    %c0_i32_0 = arith.constant 0 : i32
    return %arg0, %c0_i32 : i32, i32
  }
  func.func @transform_2(%arg0: i32) -> (i32, i32) {
    %c0_i32 = arith.constant 0 : i32
    %c0_i32_0 = arith.constant 0 : i32
    %c0_i32_1 = arith.constant 0 : i32
    return %c0_i32, %c0_i32_0 : i32, i32
  }
  func.func @transform_3(%arg0: i32) -> (i32, i32) {
    %c0_i32 = arith.constant 0 : i32
    %c0_i32_0 = arith.constant 0 : i32
    return %arg0, %c0_i32 : i32, i32
  }
}

</mosaic_0001>

<bundles_post_ra>
// kernel: tpu_custom_call.1
= control target key start
LH: loop header
LB: loop body
LE: loop exit
PB: predicated region body
PF: predicated region fallthrough
CT: control target
= control target key end

     0   :  { %8 = vsyncpa [#allocation3], 0  ;;  %s303_s0 = inlined_call_operand.hbm [shape: f32[2,256], index: 0, kind: input, shape index: {}]   ;;  %s304_s1 = inlined_call_operand.hbm [shape: f32[2,64], index: 1, kind: input, shape index: {}]   ;;  %s305_s2 = inlined_call_operand.hbm [shape: f32[64,256], index: 2, kind: input, shape index: {}]   ;;  %s306_s3 = inlined_call_operand.hbm [shape: f32[1,1], index: 3, kind: output, shape index: {}]  }
   0x1   :  { %9 = vsyncpa [#allocation6], 0  ;;  %s27_s14 = sshll.u32 %s304_s1, 4  ;;  %s28_s14 = int_to_ptr.hbm [resolvable:$true] %s27_s14 }
   0x2   :  { %10 = vsyncpa [#allocation4], 0  ;;  %s265_s15 = smov [#allocation5]   ;;  %s16_s19 = sshll.u32 %s303_s0, 4  ;;  %s17_s19 = int_to_ptr.hbm [resolvable:$true] %s16_s19 }
   0x3   :  { %s29_s16 = sshll.u32 %s265_s15, 4  ;;  %s266_s20 = smov [#allocation2]   ;;  %s30_s16 = int_to_ptr.vmem [resolvable:$true] %s29_s16 }
   0x4   :  { %32 = dma.hbm_to_vmem [thread:$0]  %s28_s14, 32, %s30_s16, [#allocation6]  }
   0x5   :  { %s18_s21 = sshll.u32 %s266_s20, 4  ;;  %s37_s24 = sshll.u32 %s305_s2, 4  ;;  %s19_s21 = int_to_ptr.vmem [resolvable:$true] %s18_s21  ;;  %s38_s24 = int_to_ptr.hbm [resolvable:$true] %s37_s24 }
   0x6   :  { %21 = dma.hbm_to_vmem [thread:$0]  %s17_s19, 64, %s19_s21, [#allocation3]  }
   0x7   :  { %s267_s1 = smov [#allocation7]   ;;  %s268_s26 = smov 256  }
   0x8   :  { %s39_s25 = sshll.u32 %s267_s1, 4  ;;  %s269_s27 = smov 16   ;;  %s40_s25 = int_to_ptr.vmem [resolvable:$true] %s39_s25 }
   0x9   :  { %45 = dma.hbm_to_vmem [thread:$0]  %s38_s24, 2048, %s40_s25, [#allocation6], %s268_s26, %s268_s26, %s269_s27  }
   0xa   :  { %259 = dma.done.wait [#allocation3], 64  }
   0xb   :  { %260 = vsyncadd [#allocation3], 4294967232 }
   0xc   :  { %261 = dma.done.wait [#allocation6], 2080  }
   0xd   :  { %262 = vsyncadd [#allocation6], 4294965216  ;;  %v74_v0 = vld [vmem:[#allocation7 + $0x78] sm:$0xff]  ;;  %v73_v1 = vld [vmem:[#allocation7 + $0x70] sm:$0xff]  ;;  %vm75_vm0 = vcmask 523264   ;;  %vm123_vm1 = vcmask 1041408  }
   0xe   :  { %v72_v2 = vld [vmem:[#allocation7 + $0x68] sm:$0xff]  ;;  %107 = vmatpush.msra.mxu1 %v74_v0  ;;  %87 = vmatpush.msra.mxu0 %v73_v1  ;;  %v71_v3 = vld [vmem:[#allocation7 + $0x60] sm:$0xff]  ;;  %v70_v4 = vld [vmem:[#allocation7 + $0x58] sm:$0xff]  ;;  %s153_s28 = sshll.u32 %s306_s3, 4  ;;  %s270_s30 = smov [#allocation8]   ;;  %s154_s28 = int_to_ptr.hbm [resolvable:$true] %s153_s28 }
   0xf   :  { %v69_v5 = vld [vmem:[#allocation7 + $0x50] sm:$0xff]  ;;  %v68_v6 = vld [vmem:[#allocation7 + $0x48] sm:$0xff]  ;;  %v67_v7 = vld [vmem:[#allocation7 + $0x40] sm:$0xff] }
  0x10   :  { %108 = vmatpush.msra.mxu1 %v72_v2  ;;  %88 = vmatpush.msra.mxu0 %v71_v3  ;;  %v66_v8 = vld [vmem:[#allocation7 + $0x38] sm:$0xff]  ;;  %v65_v9 = vld [vmem:[#allocation7 + $0x30] sm:$0xff]  ;;  %v64_v10 = vld [vmem:[#allocation7 + $0x28] sm:$0xff] }
  0x11   :  { %v63_v11 = vld [vmem:[#allocation7 + $0x20] sm:$0xff]  ;;  %v62_v12 = vld [vmem:[#allocation7 + $0x18] sm:$0xff]  ;;  %v61_v13 = vld [vmem:[#allocation7 + $0x10] sm:$0xff] }
  0x12   :  { %109 = vmatpush.msra.mxu1 %v70_v4  ;;  %89 = vmatpush.msra.mxu0 %v69_v5  ;;  %v60_v14 = vld [vmem:[#allocation7 + $0x8] sm:$0xff]  ;;  %v59_v15 = vld [vmem:[#allocation7] sm:$0xff]  ;;  %v58_v16 = vld [vmem:[#allocation5] sm:$0x3] }
  0x13   :  { %v119_v20 = vld [vmem:[#allocation2] sm:$0xf] }
  0x14   :  { %110 = vmatpush.msra.mxu1 %v68_v6  ;;  %90 = vmatpush.msra.mxu0 %v67_v7 }
  0x16   :  { %111 = vmatpush.msra.mxu1 %v66_v8  ;;  %91 = vmatpush.msra.mxu0 %v65_v9 }
  0x18   :  { %112 = vmatpush.msra.mxu1 %v64_v10  ;;  %92 = vmatpush.msra.mxu0 %v63_v11 }
  0x1a   :  { %113 = vmatpush.msra.mxu1 %v62_v12  ;;  %93 = vmatpush.msra.mxu0 %v61_v13 }
  0x1c   :  { %114 = vmatpush.msra.mxu1 %v60_v14  ;;  %94 = vmatpush.msra.mxu0 %v59_v15 }
  0x1d   :  { %166 = vmatmul.msk.f32.vlgmr.msra.gmra.mxu1 %vm75_vm0, %v58_v16  ;;  %165 = vmatmul.msk.f32.vlgmr.msra.gmra.mxu0 %vm75_vm0, %v58_v16 }
  0x9a   :  { %v116_v17 = vpop.f32.mrf.mxu1  ;;  %v96_v18 = vpop.f32.mrf.mxu0 }
  0x9b   :  { %v122_v19 = vrot.slane %v116_v17, 6 }
  0x9d   :  { %v124_v21 = vsel %vm123_vm1, %v96_v18, %v122_v19 }
  0x9e   :  { %v126_v22 = vsub.f32 %v119_v20, %v124_v21 }
  0xa0   :  { %v127_v23 = vmul.f32 %v126_v22, %v126_v22 }
  0xa2   :  { %129 = vst [vmem:[#allocation1] ss:$4 sm:$0xff] %v127_v23 }
  0xa9   :  { %v130_v24 = vld.sshfl [vmem:[#allocation1] sm:$0xff pattern:$0x73625140]  ;;  %v131_v25 = vld.sshfl [vmem:[#allocation1 + $0x8] sm:$0xff pattern:$0x73625140] }
  0xaa   :  { %v134_v26 = vsel %vm123_vm1, %v130_v24, 0.0  ;;  %v135_v27 = vsel %vm123_vm1, %v131_v25, 0.0 }
  0xab   :  { %v136_v28 = vadd.f32 %v135_v27, %v134_v26 }
  0xad   :  { %137 = vadd.xlane.f32.xlu0 %v136_v28 }
 0x120   :  { %v138_v29 = vpop.xlane.xlu0 %137 }
 0x121   :  { %v139_v30 = vrot.slane %v138_v29, 4 }
 0x123   :  { %v140_v31 = vadd.f32 %v139_v30, %v138_v29 }
 0x125   :  { %v141_v32 = vrot.slane %v140_v31, 2 }
 0x127   :  { %v142_v33 = vadd.f32 %v141_v32, %v140_v31 }
 0x129   :  { %v143_v34 = vrot.slane %v142_v33, 1 }
 0x12b   :  { %v144_v35 = vadd.f32 %v143_v34, %v142_v33 }
 0x12d   :  { %167 = vpush %v144_v35 }
 0x15e   :  { %s168_s29 = spop %167 }
 0x15f   :  { %147 = sst [smem:[#allocation8]] %s168_s29 }
 0x160   :  { %156 = dma.smem_to_hbm %s270_s30, 16, %s154_s28, [#allocation4]  }
 0x161   :  { %263 = dma.done.wait [#allocation4], 16  }
 0x162   :  { %264 = vsyncadd [#allocation4], 4294967280 }
 0x163   :  { %161 = sfence }
 0x164   :  { %162 = vsyncpa [#allocation3], 1 }
 0x165   :  { %163 = vsyncpa [#allocation6], 1 }
 0x166   :  { %164 = vsyncpa [#allocation4], 1 }

</bundles_post_ra>
